<compile_context>
chip_gen: v6e
topology: v6e:2x2x1
jax: 0.10.0
libtpu: 0.0.40
codegen_flags: <defaults>
</compile_context>

<pallas_src>
import functools

import jax
import jax.numpy as jnp
from jax.experimental import pallas as pl
from jax.experimental.pallas import tpu as pltpu

_LANE = 128      # feature dims padded to multiples of this (lane-dense loads/stores)
_SUBLANE = 8     # batch tile rows padded to multiples of this


def _round_up(x, m):
    return (x + m - 1) // m * m


def _pad_dim(d):
    return max(_LANE, _round_up(d, _LANE))


def _vmem_budget_bytes():
    """~80% of this generation's physical VMEM (~102 MiB v5e/v6e, ~51 MiB v7x)."""
    try:
        cap = int(pltpu.get_tpu_info().vmem_capacity_bytes)
    except Exception:
        cap = 128 << 20
    return max(32 << 20, int(cap * 0.8))


# ---------------------------------------------------------------------------
# Kernel
# ---------------------------------------------------------------------------
def _fused_mlp_kernel(*refs, num_layers, activate_output, carry_dtype):
    """refs = (x_ref, w0_ref, b0_ref, ..., w{L-1}_ref, b{L-1}_ref, o_ref).

    The layer loop unrolls at trace time; intermediate activations never touch
    HBM.  MXU matmul with f32 accumulation; bias + tanh epilogue in f32 on the
    VPU/EUP; the inter-layer carry is cast back to the (bf16) weight dtype.
    """
    o_ref = refs[1 + 2 * num_layers]
    x = refs[0][...]
    for i in range(num_layers):
        w = refs[1 + 2 * i][...]
        b = refs[2 + 2 * i][...]                       # (1, d_out_pad), f32
        y = jnp.dot(x.astype(w.dtype), w, preferred_element_type=jnp.float32)
        y = y + b.astype(jnp.float32)
        is_last = i == num_layers - 1
        if (not is_last) or activate_output:
            y = jnp.tanh(y)
        # TODO(synk): dropout between layers is identity here (eval-mode semantics).
        x = y if is_last else y.astype(carry_dtype)
    o_ref[...] = x.astype(o_ref.dtype)


# ---------------------------------------------------------------------------
# Parameter prep (hoisted out of the per-call path)
# ---------------------------------------------------------------------------
def init_feedforward_params(key, input_dim, out_dim, hidden_sizes):
    """nn.Linear-style uniform(-1/sqrt(fan_in), 1/sqrt(fan_in)) init, f32."""
    n_inputs = [input_dim] + list(hidden_sizes)
    n_outputs = list(hidden_sizes) + [out_dim]
    params = []
    for n_in, n_out in zip(n_inputs, n_outputs):
        key, kw, kb = jax.random.split(key, 3)
        bound = 1.0 / (n_in ** 0.5)
        w = jax.random.uniform(kw, (n_in, n_out), jnp.float32, -bound, bound)
        b = jax.random.uniform(kb, (n_out,), jnp.float32, -bound, bound)
        params.append((w, b))
    return params


def prep_feedforward_params(params, *, param_dtype=jnp.bfloat16):
    """Pad to lane-dense shapes and cast ONCE.  Returns [(w_pad, b_pad, d_in, d_out)].

    Padding is self-consistent (pad bias cols = 0, tanh(0) = 0, pad weight rows
    of the next layer = 0), so it never leaks into the real outputs.
    """
    prepped = []
    for w, b in params:
        d_in, d_out = w.shape
        di_p, do_p = _pad_dim(d_in), _pad_dim(d_out)
        wp = jnp.zeros((di_p, do_p), param_dtype).at[:d_in, :d_out].set(
            w.astype(param_dtype))
        bp = jnp.zeros((1, do_p), jnp.float32).at[0, :d_out].set(
            b.reshape(-1).astype(jnp.float32))
        prepped.append((wp, bp, d_in, d_out))
    return prepped


def _param_bytes(chunk):
    return sum(int(wp.size) * wp.dtype.itemsize + int(bp.size) * bp.dtype.itemsize
               for (wp, bp, _, _) in chunk)


def _chunk_layers(prepped, max_resident_bytes):
    """Greedy split so each chunk's resident params fit the VMEM allowance."""
    chunks, cur = [], []
    for layer in prepped:
        if cur and _param_bytes(cur + [layer]) > max_resident_bytes:
            chunks.append(cur)
            cur = []
        cur.append(layer)
        # TODO(synk): a single layer larger than the allowance would need K/N tiling
        # of the weight (emit_pipeline over HBM-resident chunks); kept whole here.
    if cur:
        chunks.append(cur)
    return chunks


# ---------------------------------------------------------------------------
# One fused pallas_call over a chunk of layers
# ---------------------------------------------------------------------------
def _fused_chunk(x, chunk, *, activate_output, block_rows, vmem_budget):
    num_layers = len(chunk)
    B, d0 = x.shape
    if d0 != chunk[0][2]:
        raise ValueError(f"input feature dim {d0} != layer fan_in {chunk[0][2]}")

    dims_pad = [_pad_dim(d0)] + [_pad_dim(d_out) for (_, _, _, d_out) in chunk]
    d_last = chunk[-1][3]
    act_dtype = x.dtype
    act_itemsize = jnp.dtype(act_dtype).itemsize
    resident_bytes = _param_bytes(chunk)

    # Batch tile: largest tm that fits the streaming allowance (x + out, double-
    # buffered), rebalanced so the last tile wastes < 8 rows; force >= 2 tiles
    # when B allows so the "parallel" axis shards across v7x's 2 TensorCores.
    per_row_stream = 2 * (dims_pad[0] + dims_pad[-1]) * act_itemsize
    avail = max(vmem_budget - resident_bytes - (4 << 20), per_row_stream * _SUBLANE)
    tm_cap = max(_SUBLANE, (avail // per_row_stream) // _SUBLANE * _SUBLANE)
    tm_cap = int(min(tm_cap, block_rows))
    n_tiles = pl.cdiv(B, tm_cap)
    if B > _SUBLANE:
        n_tiles = max(n_tiles, 2)
    tm = int(min(tm_cap, _round_up(pl.cdiv(B, n_tiles), _SUBLANE)))
    B_pad = _round_up(B, tm)
    grid = (B_pad // tm,)

    # Only the activation is padded per call; params were padded once at prep time.
    if (B_pad, dims_pad[0]) == (B, d0):
        x_p = x
    else:
        x_p = jnp.zeros((B_pad, dims_pad[0]), act_dtype).at[:B, :d0].set(x)

    flops = 2 * B_pad * sum(dims_pad[i] * dims_pad[i + 1] for i in range(num_layers))
    transcendentals = B_pad * sum(
        dims_pad[i + 1] for i in range(num_layers)
        if i < num_layers - 1 or activate_output)
    bytes_accessed = (B_pad * dims_pad[0] * act_itemsize + resident_bytes
                      + B_pad * dims_pad[-1] * act_itemsize)
    cost = pl.CostEstimate(flops=flops, transcendentals=transcendentals,
                           bytes_accessed=bytes_accessed)

    kernel = functools.partial(
        _fused_mlp_kernel, num_layers=num_layers,
        activate_output=activate_output, carry_dtype=chunk[0][0].dtype)

    def build(single_buffer_params):
        in_specs = [pl.BlockSpec((tm, dims_pad[0]), lambda i: (i, 0))]
        flat_inputs = [x_p]
        for wp, bp, _, _ in chunk:
            if single_buffer_params:
                # Constant index_map -> fetched once; single-buffer to halve the VMEM
                # reserved for the resident parameter stack.
                w_spec = pl.BlockSpec(wp.shape, lambda i: (0, 0),
                                      pipeline_mode=pl.Buffered(1))
                b_spec = pl.BlockSpec(bp.shape, lambda i: (0, 0),
                                      pipeline_mode=pl.Buffered(1))
            else:
                w_spec = pl.BlockSpec(wp.shape, lambda i: (0, 0))
                b_spec = pl.BlockSpec(bp.shape, lambda i: (0, 0))
            in_specs += [w_spec, b_spec]
            flat_inputs += [wp, bp]
        out_specs = pl.BlockSpec((tm, dims_pad[-1]), lambda i: (i, 0))

        param_buf = 1 if single_buffer_params else 2
        stream_bytes = 2 * tm * (dims_pad[0] + dims_pad[-1]) * act_itemsize
        vmem_limit = int(min(max(stream_bytes + param_buf * resident_bytes + (4 << 20),
                                 32 << 20), vmem_budget))

        call = pl.pallas_call(
            kernel,
            out_shape=jax.ShapeDtypeStruct((B_pad, dims_pad[-1]), act_dtype),
            grid=grid,
            in_specs=in_specs,
            out_specs=out_specs,
            cost_estimate=cost,
            compiler_params=pltpu.CompilerParams(
                dimension_semantics=("parallel",),   # batch tiles independent (megacore)
                vmem_limit_bytes=vmem_limit,
            ),
        )
        return call, flat_inputs

    try:
        call, flat_inputs = build(single_buffer_params=True)
        out_p = call(*flat_inputs)
    except Exception:
        # pipeline_mode / Buffered(1) unsupported on this jax version: fall back to
        # default double-buffered parameter blocks (correct, slightly more VMEM).
        call, flat_inputs = build(single_buffer_params=False)
        out_p = call(*flat_inputs)

    return out_p[:B, :d_last]


# ---------------------------------------------------------------------------
# Public wrapper (FeedForward.forward, eval mode)
# ---------------------------------------------------------------------------
def feedforward(x, prepped_params, *, activate_output=True, block_rows=512,
                max_resident_bytes=None):
    """x: (batch, input_dim); prepped_params from prep_feedforward_params()."""
    vmem_budget = _vmem_budget_bytes()
    if max_resident_bytes is None:
        max_resident_bytes = int(vmem_budget * 0.4)
    chunks = _chunk_layers(prepped_params, max_resident_bytes)

    out = x
    for ci, chunk in enumerate(chunks):
        last = ci == len(chunks) - 1
        out = _fused_chunk(out, chunk,
                           activate_output=(activate_output if last else True),
                           block_rows=block_rows, vmem_budget=vmem_budget)
    return out


def _reference(x, params, *, activate_output):
    num_layers = len(params)
    out = x
    for i, (w, b) in enumerate(params):
        out = out @ w + b.reshape(1, -1)
        if (i < num_layers - 1) or activate_output:
            out = jnp.tanh(out)
    return out


if __name__ == "__main__":
    key = jax.random.PRNGKey(0)
    k1x, k1p, k2x, k2p, k3x, k3p = jax.random.split(key, 6)

    # Config 1: f32 params (tight-tolerance numerics check), single fused call.
    x1 = jax.random.normal(k1x, (8, 32), jnp.float32)
    p1 = init_feedforward_params(k1p, 32, 16, hidden_sizes=(64,))
    p1_prep = prep_feedforward_params(p1, param_dtype=jnp.float32)   # prep ONCE
    y1 = feedforward(x1, p1_prep, activate_output=True)
    jax.block_until_ready(y1)
    r1 = _reference(x1, p1, activate_output=True)
    assert y1.shape == (8, 16)
    assert jnp.allclose(y1, r1, atol=1e-4, rtol=1e-4)

    # Config 2: bf16 params (fast MXU operand path), ragged batch, 3 layers,
    # no final activation (exercises padding + last-layer branch).
    x2 = jax.random.normal(k2x, (10, 40), jnp.float32)
    p2 = init_feedforward_params(k2p, 40, 24, hidden_sizes=(64, 48))
    p2_prep = prep_feedforward_params(p2)                            # bf16 default
    y2 = feedforward(x2, p2_prep, activate_output=False)
    jax.block_until_ready(y2)
    r2 = _reference(x2, p2, activate_output=False)
    assert y2.shape == (10, 24)
    assert jnp.allclose(y2, r2, atol=3e-2, rtol=3e-2)

    # Config 3: force the chunked fallback (parameter stack "too big" for VMEM
    # residency) -> layer stack split across multiple fused pallas_calls.
    x3 = jax.random.normal(k3x, (6, 32), jnp.float32)
    p3 = init_feedforward_params(k3p, 32, 16, hidden_sizes=(64, 48))
    p3_prep = prep_feedforward_params(p3)
    y3 = feedforward(x3, p3_prep, activate_output=True,
                     max_resident_bytes=40 * 1024)    # tiny cap -> multiple chunks
    jax.block_until_ready(y3)
    r3 = _reference(x3, p3, activate_output=True)
    assert y3.shape == (6, 16)
    assert jnp.allclose(y3, r3, atol=3e-2, rtol=3e-2)

    print("KERNEL_OK")
</pallas_src>

<mosaic_0001>
module attributes {stable_mosaic.version = 11 : i64} {
  func.func @_fused_mlp_kernel(%arg0: i32, %arg1: memref<8x128xf32, #tpu.memory_space<vmem>>, %arg2: memref<128x128xf32, #tpu.memory_space<vmem>>, %arg3: memref<1x128xf32, #tpu.memory_space<vmem>>, %arg4: memref<128x128xf32, #tpu.memory_space<vmem>>, %arg5: memref<1x128xf32, #tpu.memory_space<vmem>>, %arg6: memref<8x128xf32, #tpu.memory_space<vmem>>) attributes {dimension_semantics = [#tpu.dimension_semantics<parallel>], iteration_bounds = array<i64: 1>, scalar_prefetch = 0 : i64, scratch_operands = 0 : i64, tpu.core_type = #tpu.core_type<tc>, window_params = [{transform_indices = @transform_0, window_bounds = array<i64: 8, 128>}, {pipeline_mode = #tpu.pipeline_mode<synchronous>, transform_indices = @transform_1, window_bounds = array<i64: 128, 128>}, {pipeline_mode = #tpu.pipeline_mode<synchronous>, transform_indices = @transform_2, window_bounds = array<i64: 1, 128>}, {pipeline_mode = #tpu.pipeline_mode<synchronous>, transform_indices = @transform_3, window_bounds = array<i64: 128, 128>}, {pipeline_mode = #tpu.pipeline_mode<synchronous>, transform_indices = @transform_4, window_bounds = array<i64: 1, 128>}, {transform_indices = @transform_5, window_bounds = array<i64: 8, 128>}]} {
    %c0 = arith.constant 0 : index
    %c0_0 = arith.constant 0 : index
    %0 = vector.load %arg1[%c0, %c0_0] : memref<8x128xf32, #tpu.memory_space<vmem>>, vector<8x128xf32>
    %c0_1 = arith.constant 0 : index
    %c0_2 = arith.constant 0 : index
    %1 = vector.load %arg2[%c0_1, %c0_2] : memref<128x128xf32, #tpu.memory_space<vmem>>, vector<128x128xf32>
    %c0_3 = arith.constant 0 : index
    %c0_4 = arith.constant 0 : index
    %2 = vector.load %arg3[%c0_3, %c0_4] : memref<1x128xf32, #tpu.memory_space<vmem>>, vector<1x128xf32>
    %cst = arith.constant dense<0.000000e+00> : vector<8x128xf32>
    %3 = tpu.matmul %0, %1, %cst {dimension_numbers = #tpu.dot_dimension_numbers<[1], [0], [0], [1], [0, 0, 1, 1], [], []>} : vector<8x128xf32>, vector<128x128xf32>, vector<8x128xf32> -> vector<8x128xf32>
    %4 = vector.broadcast %2 : vector<1x128xf32> to vector<8x128xf32>
    %5 = arith.addf %3, %4 : vector<8x128xf32>
    %6 = math.tanh %5 : vector<8x128xf32>
    %c0_5 = arith.constant 0 : index
    %c0_6 = arith.constant 0 : index
    %7 = vector.load %arg4[%c0_5, %c0_6] : memref<128x128xf32, #tpu.memory_space<vmem>>, vector<128x128xf32>
    %c0_7 = arith.constant 0 : index
    %c0_8 = arith.constant 0 : index
    %8 = vector.load %arg5[%c0_7, %c0_8] : memref<1x128xf32, #tpu.memory_space<vmem>>, vector<1x128xf32>
    %cst_9 = arith.constant dense<0.000000e+00> : vector<8x128xf32>
    %9 = tpu.matmul %6, %7, %cst_9 {dimension_numbers = #tpu.dot_dimension_numbers<[1], [0], [0], [1], [0, 0, 1, 1], [], []>} : vector<8x128xf32>, vector<128x128xf32>, vector<8x128xf32> -> vector<8x128xf32>
    %10 = vector.broadcast %8 : vector<1x128xf32> to vector<8x128xf32>
    %11 = arith.addf %9, %10 : vector<8x128xf32>
    %12 = math.tanh %11 : vector<8x128xf32>
    %c0_10 = arith.constant 0 : index
    %c0_11 = arith.constant 0 : index
    %13 = vector.load %arg6[%c0_10, %c0_11] : memref<8x128xf32, #tpu.memory_space<vmem>>, vector<8x128xf32>
    tpu.vector_store %arg6[%c0_10, %c0_11], %12 {strides = array<i32>} : memref<8x128xf32, #tpu.memory_space<vmem>>, vector<8x128xf32>,
    return
  }
  func.func @transform_0(%arg0: i32) -> (i32, i32) {
    %c0_i32 = arith.constant 0 : i32
    %c0_i32_0 = arith.constant 0 : i32
    return %arg0, %c0_i32 : i32, i32
  }
  func.func @transform_1(%arg0: i32) -> (i32, i32) {
    %c0_i32 = arith.constant 0 : i32
    %c0_i32_0 = arith.constant 0 : i32
    %c0_i32_1 = arith.constant 0 : i32
    return %c0_i32, %c0_i32_0 : i32, i32
  }
  func.func @transform_2(%arg0: i32) -> (i32, i32) {
    %c0_i32 = arith.constant 0 : i32
    %c0_i32_0 = arith.constant 0 : i32
    %c0_i32_1 = arith.constant 0 : i32
    return %c0_i32, %c0_i32_0 : i32, i32
  }
  func.func @transform_3(%arg0: i32) -> (i32, i32) {
    %c0_i32 = arith.constant 0 : i32
    %c0_i32_0 = arith.constant 0 : i32
    %c0_i32_1 = arith.constant 0 : i32
    return %c0_i32, %c0_i32_0 : i32, i32
  }
  func.func @transform_4(%arg0: i32) -> (i32, i32) {
    %c0_i32 = arith.constant 0 : i32
    %c0_i32_0 = arith.constant 0 : i32
    %c0_i32_1 = arith.constant 0 : i32
    return %c0_i32, %c0_i32_0 : i32, i32
  }
  func.func @transform_5(%arg0: i32) -> (i32, i32) {
    %c0_i32 = arith.constant 0 : i32
    %c0_i32_0 = arith.constant 0 : i32
    return %arg0, %c0_i32 : i32, i32
  }
}

module attributes {stable_mosaic.version = 11 : i64} {
  func.func @_fused_mlp_kernel(%arg0: i32, %arg1: memref<8x128xf32, #tpu.memory_space<vmem>>, %arg2: memref<128x128xf32, #tpu.memory_space<vmem>>, %arg3: memref<1x128xf32, #tpu.memory_space<vmem>>, %arg4: memref<128x128xf32, #tpu.memory_space<vmem>>, %arg5: memref<1x128xf32, #tpu.memory_space<vmem>>, %arg6: memref<8x128xf32, #tpu.memory_space<vmem>>) attributes {dimension_semantics = [#tpu.dimension_semantics<parallel>], iteration_bounds = array<i64: 1>, scalar_prefetch = 0 : i64, scratch_operands = 0 : i64, tpu.core_type = #tpu.core_type<tc>, window_params = [{transform_indices = @transform_0, window_bounds = array<i64: 8, 128>}, {pipeline_mode = #tpu.pipeline_mode<synchronous>, transform_indices = @transform_1, window_bounds = array<i64: 128, 128>}, {pipeline_mode = #tpu.pipeline_mode<synchronous>, transform_indices = @transform_2, window_bounds = array<i64: 1, 128>}, {pipeline_mode = #tpu.pipeline_mode<synchronous>, transform_indices = @transform_3, window_bounds = array<i64: 128, 128>}, {pipeline_mode = #tpu.pipeline_mode<synchronous>, transform_indices = @transform_4, window_bounds = array<i64: 1, 128>}, {transform_indices = @transform_5, window_bounds = array<i64: 8, 128>}]} {
    %c0 = arith.constant 0 : index
    %c0_0 = arith.constant 0 : index
    %0 = vector.load %arg1[%c0, %c0_0] : memref<8x128xf32, #tpu.memory_space<vmem>>, vector<8x128xf32>
    %c0_1 = arith.constant 0 : index
    %c0_2 = arith.constant 0 : index
    %1 = vector.load %arg2[%c0_1, %c0_2] : memref<128x128xf32, #tpu.memory_space<vmem>>, vector<128x128xf32>
    %c0_3 = arith.constant 0 : index
    %c0_4 = arith.constant 0 : index
    %2 = vector.load %arg3[%c0_3, %c0_4] : memref<1x128xf32, #tpu.memory_space<vmem>>, vector<1x128xf32>
    %cst = arith.constant dense<0.000000e+00> : vector<8x128xf32>
    %3 = tpu.matmul %0, %1, %cst {dimension_numbers = #tpu.dot_dimension_numbers<[1], [0], [0], [1], [0, 0, 1, 1], [], []>} : vector<8x128xf32>, vector<128x128xf32>, vector<8x128xf32> -> vector<8x128xf32>
    %4 = vector.broadcast %2 : vector<1x128xf32> to vector<8x128xf32>
    %5 = arith.addf %3, %4 : vector<8x128xf32>
    %6 = math.tanh %5 : vector<8x128xf32>
    %c0_5 = arith.constant 0 : index
    %c0_6 = arith.constant 0 : index
    %7 = vector.load %arg4[%c0_5, %c0_6] : memref<128x128xf32, #tpu.memory_space<vmem>>, vector<128x128xf32>
    %c0_7 = arith.constant 0 : index
    %c0_8 = arith.constant 0 : index
    %8 = vector.load %arg5[%c0_7, %c0_8] : memref<1x128xf32, #tpu.memory_space<vmem>>, vector<1x128xf32>
    %cst_9 = arith.constant dense<0.000000e+00> : vector<8x128xf32>
    %9 = tpu.matmul %6, %7, %cst_9 {dimension_numbers = #tpu.dot_dimension_numbers<[1], [0], [0], [1], [0, 0, 1, 1], [], []>} : vector<8x128xf32>, vector<128x128xf32>, vector<8x128xf32> -> vector<8x128xf32>
    %10 = vector.broadcast %8 : vector<1x128xf32> to vector<8x128xf32>
    %11 = arith.addf %9, %10 : vector<8x128xf32>
    %12 = math.tanh %11 : vector<8x128xf32>
    %c0_10 = arith.constant 0 : index
    %c0_11 = arith.constant 0 : index
    %13 = vector.load %arg6[%c0_10, %c0_11] : memref<8x128xf32, #tpu.memory_space<vmem>>, vector<8x128xf32>
    tpu.vector_store %arg6[%c0_10, %c0_11], %12 {strides = array<i32>} : memref<8x128xf32, #tpu.memory_space<vmem>>, vector<8x128xf32>,
    return
  }
  func.func @transform_0(%arg0: i32) -> (i32, i32) {
    %c0_i32 = arith.constant 0 : i32
    %c0_i32_0 = arith.constant 0 : i32
    return %arg0, %c0_i32 : i32, i32
  }
  func.func @transform_1(%arg0: i32) -> (i32, i32) {
    %c0_i32 = arith.constant 0 : i32
    %c0_i32_0 = arith.constant 0 : i32
    %c0_i32_1 = arith.constant 0 : i32
    return %c0_i32, %c0_i32_0 : i32, i32
  }
  func.func @transform_2(%arg0: i32) -> (i32, i32) {
    %c0_i32 = arith.constant 0 : i32
    %c0_i32_0 = arith.constant 0 : i32
    %c0_i32_1 = arith.constant 0 : i32
    return %c0_i32, %c0_i32_0 : i32, i32
  }
  func.func @transform_3(%arg0: i32) -> (i32, i32) {
    %c0_i32 = arith.constant 0 : i32
    %c0_i32_0 = arith.constant 0 : i32
    %c0_i32_1 = arith.constant 0 : i32
    return %c0_i32, %c0_i32_0 : i32, i32
  }
  func.func @transform_4(%arg0: i32) -> (i32, i32) {
    %c0_i32 = arith.constant 0 : i32
    %c0_i32_0 = arith.constant 0 : i32
    %c0_i32_1 = arith.constant 0 : i32
    return %c0_i32, %c0_i32_0 : i32, i32
  }
  func.func @transform_5(%arg0: i32) -> (i32, i32) {
    %c0_i32 = arith.constant 0 : i32
    %c0_i32_0 = arith.constant 0 : i32
    return %arg0, %c0_i32 : i32, i32
  }
}

</mosaic_0001>

<bundles_post_ra>
// kernel: tpu_custom_call.1
= control target key start
LH: loop header
LB: loop body
LE: loop exit
PB: predicated region body
PF: predicated region fallthrough
CT: control target
= control target key end

     0   :  { %10 = vsyncpa [#allocation3], 0  ;;  %s560_s0 = inlined_call_operand.hbm [shape: f32[8,128], index: 0, kind: input, shape index: {}]   ;;  %s561_s1 = inlined_call_operand.hbm [shape: f32[128,128], index: 1, kind: input, shape index: {}]   ;;  %s562_s2 = inlined_call_operand.vmem [shape: f32[1,128], index: 2, kind: input, shape index: {}]   ;;  %s563_s3 = inlined_call_operand.hbm [shape: f32[128,128], index: 3, kind: input, shape index: {}]   ;;  %s564_s4 = inlined_call_operand.vmem [shape: f32[1,128], index: 4, kind: input, shape index: {}]   ;;  %s565_s5 = inlined_call_operand.hbm [shape: f32[8,128], index: 5, kind: output, shape index: {}]  }
   0x1   :  { %11 = vsyncpa [#allocation6], 0 }
   0x2   :  { %12 = vsyncpa [#allocation4], 0  ;;  %s470_s18 = smov [#allocation5]  }
   0x3   :  { %s28_s19 = sshll.u32 %s470_s18, 4  ;;  %s29_s19 = int_to_ptr.vmem [resolvable:$true] %s28_s19 }
   0x4   :  { %s392_s20 = scalar_lea.vmem %s29_s19, 2048  ;;  %p397_p1 = scmp.lt.s32.totalorder %s29_s19, %s29_s19 }
   0x5   :  { %p393_p0 = scmp.ne.s32.totalorder %s29_s19, %s392_s20  ;;  %p398_p2 = scmp.lt.s32.totalorder %s392_s20, %s392_s20 }
   0x7   :  { %p399_p3 = por %p398_p2, %p397_p1 }
   0x9   :  { %p400_p4 = pnand %p399_p3, %p393_p0 }
   0xb   :  { %403 = shalt.err (!%p400_p4)
}
   0xc   :  { %s471_s21 = smov 128   ;;  %s472_s22 = smov 8  }
   0xd   :  { %34 = dma.hbm_to_vmem [thread:$0]  %s561_s1, 2048, %s29_s19, [#allocation6], %s471_s21, %s471_s21, %s472_s22  }
   0xe   :  { %s473_s25 = smov [#allocation2]   ;;  %s474_s27 = smov [#allocation7]  }
   0xf   :  { %s19_s26 = sshll.u32 %s473_s25, 4  ;;  %s42_s28 = sshll.u32 %s474_s27, 4  ;;  %s20_s26 = int_to_ptr.vmem [resolvable:$true] %s19_s26  ;;  %s43_s28 = int_to_ptr.vmem [resolvable:$true] %s42_s28 }
  0x10   :  { %s412_s29 = scalar_lea.vmem %s20_s26, 128  ;;  %p417_p6 = scmp.lt.s32.totalorder %s20_s26, %s20_s26 }
  0x11   :  { %p413_p5 = scmp.ne.s32.totalorder %s20_s26, %s412_s29  ;;  %p418_p7 = scmp.lt.s32.totalorder %s412_s29, %s412_s29 }
  0x13   :  { %p419_p8 = por %p418_p7, %p417_p6 }
  0x15   :  { %p420_p9 = pnand %p419_p8, %p413_p5 }
  0x17   :  { %423 = shalt.err (!%p420_p9)
}
  0x18   :  { %22 = dma.hbm_to_vmem [thread:$0]  %s560_s0, 128, %s20_s26, [#allocation3]  }
  0x19   :  { %s432_s7 = scalar_lea.vmem %s43_s28, 2048  ;;  %p437_p11 = scmp.lt.s32.totalorder %s43_s28, %s43_s28 }
  0x1a   :  { %p433_p10 = scmp.ne.s32.totalorder %s43_s28, %s432_s7  ;;  %p438_p12 = scmp.lt.s32.totalorder %s432_s7, %s432_s7 }
  0x1c   :  { %p439_p13 = por %p438_p12, %p437_p11 }
  0x1e   :  { %p440_p0 = pnand %p439_p13, %p433_p10 }
  0x20   :  { %443 = shalt.err (!%p440_p0)
}
  0x21   :  { %48 = dma.hbm_to_vmem [thread:$0]  %s563_s3, 2048, %s43_s28, [#allocation6], %s471_s21, %s471_s21, %s472_s22  }
  0x22   :  { %464 = dma.done.wait [#allocation3], 128  }
  0x23   :  { %465 = vsyncadd [#allocation3], 4294967168 }
  0x24   :  { %466 = dma.done.wait [#allocation6], 4096  }
  0x25   :  { %467 = vsyncadd [#allocation6], 4294963200  ;;  %v475_v0 = vmov 0.0   ;;  %vm476_vm0 = vmmov 0   ;;  %v76_v1 = vld [vmem:[#allocation5 + $0x78] sm:$0xff]  ;;  %v75_v2 = vld [vmem:[#allocation5 + $0x70] sm:$0xff] }
  0x26   :  { %302 = vmatprep.subr.mxu0 %v475_v0  ;;  %334 = vmatprep.mubr.msk.f32.mxu0 %vm476_vm0, %v475_v0  ;;  %v74_v3 = vld [vmem:[#allocation5 + $0x68] sm:$0xff]  ;;  %v73_v4 = vld [vmem:[#allocation5 + $0x60] sm:$0xff]  ;;  %v170_v5 = vld [vmem:[#allocation7 + $0x78] sm:$0xff]  ;;  %s477_s11 = smov [#allocation8]  }
  0x27   :  { %337 = vmatprep.subr.mxu1 %v475_v0  ;;  %369 = vmatprep.mubr.msk.f32.mxu1 %vm476_vm0, %v475_v0  ;;  %v72_v6 = vld [vmem:[#allocation5 + $0x58] sm:$0xff]  ;;  %v169_v7 = vld [vmem:[#allocation7 + $0x70] sm:$0xff]  ;;  %v168_v8 = vld [vmem:[#allocation7 + $0x68] sm:$0xff]  ;;  %s256_s12 = sshll.u32 %s477_s11, 4  ;;  %s257_s12 = int_to_ptr.vmem [resolvable:$true] %s256_s12 }
  0x28   :  { %303 = vmatpush3.msra.mxu0 %v76_v1  ;;  %338 = vmatpush3.msra.mxu1 %v170_v5  ;;  %v71_v9 = vld [vmem:[#allocation5 + $0x50] sm:$0xff]  ;;  %v167_v10 = vld [vmem:[#allocation7 + $0x60] sm:$0xff]  ;;  %v70_v11 = vld [vmem:[#allocation5 + $0x48] sm:$0xff]  ;;  %p449_p2 = scmp.lt.s32.totalorder %s257_s12, %s257_s12 }
  0x29   :  { %304 = vmatprep.subr.mxu0 %v475_v0  ;;  %339 = vmatprep.subr.mxu1 %v475_v0  ;;  %v166_v12 = vld [vmem:[#allocation7 + $0x58] sm:$0xff]  ;;  %v69_v13 = vld [vmem:[#allocation5 + $0x40] sm:$0xff]  ;;  %v165_v14 = vld [vmem:[#allocation7 + $0x50] sm:$0xff] }
  0x2a   :  { %305 = vmatpush3.msra.mxu0 %v75_v2  ;;  %340 = vmatpush3.msra.mxu1 %v169_v7  ;;  %v68_v15 = vld [vmem:[#allocation5 + $0x38] sm:$0xff]  ;;  %v164_v16 = vld [vmem:[#allocation7 + $0x48] sm:$0xff]  ;;  %v67_v17 = vld [vmem:[#allocation5 + $0x30] sm:$0xff] }
  0x2b   :  { %306 = vmatprep.subr.mxu0 %v475_v0  ;;  %341 = vmatprep.subr.mxu1 %v475_v0  ;;  %v66_v18 = vld [vmem:[#allocation5 + $0x28] sm:$0xff]  ;;  %v65_v19 = vld [vmem:[#allocation5 + $0x20] sm:$0xff]  ;;  %v64_v20 = vld [vmem:[#allocation5 + $0x18] sm:$0xff] }
  0x2c   :  { %307 = vmatpush3.msra.mxu0 %v74_v3  ;;  %342 = vmatpush3.msra.mxu1 %v168_v8  ;;  %v63_v21 = vld [vmem:[#allocation5 + $0x10] sm:$0xff]  ;;  %v62_v22 = vld [vmem:[#allocation5 + $0x8] sm:$0xff]  ;;  %v61_v23 = vld [vmem:[#allocation5] sm:$0xff] }
  0x2d   :  { %308 = vmatprep.subr.mxu0 %v475_v0  ;;  %343 = vmatprep.subr.mxu1 %v475_v0  ;;  %v60_v24 = vld [vmem:[#allocation2] sm:$0xff]  ;;  %v163_v25 = vld [vmem:[#allocation7 + $0x40] sm:$0xff]  ;;  %v161_v27 = vld [vmem:[#allocation7 + $0x30] sm:$0xff] }
  0x2e   :  { %309 = vmatpush3.msra.mxu0 %v73_v4  ;;  %344 = vmatpush3.msra.mxu1 %v167_v10  ;;  %v162_v26 = vld [vmem:[#allocation7 + $0x38] sm:$0xff]  ;;  %v160_v28 = vld [vmem:[#allocation7 + $0x28] sm:$0xff]  ;;  %v159_v29 = vld [vmem:[#allocation7 + $0x20] sm:$0xff] }
  0x2f   :  { %310 = vmatprep.subr.mxu0 %v475_v0  ;;  %345 = vmatprep.subr.mxu1 %v475_v0  ;;  %v158_v30 = vld [vmem:[#allocation7 + $0x18] sm:$0xff]  ;;  %v157_v31 = vld [vmem:[#allocation7 + $0x10] sm:$0xff]  ;;  %v156_v32 = vld [vmem:[#allocation7 + $0x8] sm:$0xff] }
  0x30   :  { %311 = vmatpush3.msra.mxu0 %v72_v6  ;;  %346 = vmatpush3.msra.mxu1 %v166_v12  ;;  %v155_v33 = vld [vmem:[#allocation7] sm:$0xff]  ;;  %v266_v34 = vld [vmem:[%s562_s2] ss:$0 sm:$0xff]  ;;  %s444_s2 = scalar_lea.vmem %s257_s12, 128 }
  0x31   :  { %312 = vmatprep.subr.mxu0 %v475_v0  ;;  %347 = vmatprep.subr.mxu1 %v475_v0  ;;  %v267_v39 = vld [vmem:[%s564_s4] ss:$0 sm:$0xff]  ;;  %p445_p1 = scmp.ne.s32.totalorder %s257_s12, %s444_s2  ;;  %p450_p3 = scmp.lt.s32.totalorder %s444_s2, %s444_s2 }
  0x32   :  { %313 = vmatpush3.msra.mxu0 %v71_v9  ;;  %348 = vmatpush3.msra.mxu1 %v165_v14 }
  0x33   :  { %314 = vmatprep.subr.mxu0 %v475_v0  ;;  %349 = vmatprep.subr.mxu1 %v475_v0  ;;  %p451_p4 = por %p450_p3, %p449_p2 }
  0x34   :  { %315 = vmatpush3.msra.mxu0 %v70_v11  ;;  %350 = vmatpush3.msra.mxu1 %v164_v16 }
  0x35   :  { %316 = vmatprep.subr.mxu0 %v475_v0  ;;  %351 = vmatprep.subr.mxu1 %v475_v0  ;;  %p452_p5 = pnand %p451_p4, %p445_p1 }
  0x36   :  { %317 = vmatpush3.msra.mxu0 %v69_v13  ;;  %352 = vmatpush3.msra.mxu1 %v163_v25 }
  0x37   :  { %318 = vmatprep.subr.mxu0 %v475_v0  ;;  %353 = vmatprep.subr.mxu1 %v475_v0 }
  0x38   :  { %319 = vmatpush3.msra.mxu0 %v68_v15  ;;  %354 = vmatpush3.msra.mxu1 %v162_v26 }
  0x39   :  { %320 = vmatprep.subr.mxu0 %v475_v0  ;;  %355 = vmatprep.subr.mxu1 %v475_v0 }
  0x3a   :  { %321 = vmatpush3.msra.mxu0 %v67_v17  ;;  %356 = vmatpush3.msra.mxu1 %v161_v27 }
  0x3b   :  { %322 = vmatprep.subr.mxu0 %v475_v0  ;;  %357 = vmatprep.subr.mxu1 %v475_v0 }
  0x3c   :  { %323 = vmatpush3.msra.mxu0 %v66_v18  ;;  %358 = vmatpush3.msra.mxu1 %v160_v28 }
  0x3d   :  { %324 = vmatprep.subr.mxu0 %v475_v0  ;;  %359 = vmatprep.subr.mxu1 %v475_v0 }
  0x3e   :  { %325 = vmatpush3.msra.mxu0 %v65_v19  ;;  %360 = vmatpush3.msra.mxu1 %v159_v29 }
  0x3f   :  { %326 = vmatprep.subr.mxu0 %v475_v0  ;;  %361 = vmatprep.subr.mxu1 %v475_v0 }
  0x40   :  { %327 = vmatpush3.msra.mxu0 %v64_v20  ;;  %362 = vmatpush3.msra.mxu1 %v158_v30 }
  0x41   :  { %328 = vmatprep.subr.mxu0 %v475_v0  ;;  %363 = vmatprep.subr.mxu1 %v475_v0 }
  0x42   :  { %329 = vmatpush3.msra.mxu0 %v63_v21  ;;  %364 = vmatpush3.msra.mxu1 %v157_v31 }
  0x43   :  { %330 = vmatprep.subr.mxu0 %v475_v0  ;;  %365 = vmatprep.subr.mxu1 %v475_v0 }
  0x44   :  { %331 = vmatpush3.msra.mxu0 %v62_v22  ;;  %366 = vmatpush3.msra.mxu1 %v156_v32 }
  0x45   :  { %332 = vmatprep.subr.mxu0 %v475_v0  ;;  %367 = vmatprep.subr.mxu1 %v475_v0 }
  0x46   :  { %333 = vmatpush3.msra.mxu0 %v61_v23  ;;  %368 = vmatpush3.msra.mxu1 %v155_v33 }
  0x47   :  { %335 = vmatmul.mubr.f32.vlgmr.msra.gmra.mxu0 %v60_v24 }
 0x107   :  { %v150_v35 = vpop.f32.mrf.mxu0 }
 0x108   :  { %v151_v36 = vadd.f32 %v266_v34, %v150_v35 }
 0x109   :  { %v336_v37 = vpop.f32.mrf.mxu0 }
 0x10a   :  { %380 = vtanh.f32 %v151_v36 }
 0x117   :  { %v381_v38 = vpop.eup %380 }
 0x118   :  { %370 = vmatmul.mubr.f32.vlgmr.msra.gmra.mxu1 %v381_v38 }
 0x1d8   :  { %v244_v40 = vpop.f32.mrf.mxu1 }
 0x1d9   :  { %v245_v41 = vadd.f32 %v267_v39, %v244_v40 }
 0x1da   :  { %v371_v42 = vpop.f32.mrf.mxu1 }
 0x1db   :  { %382 = vtanh.f32 %v245_v41 }
 0x1e8   :  { %v383_v43 = vpop.eup %382 }
 0x1e9   :  { %249 = vst [vmem:[#allocation8] sm:$0xff] %v383_v43 }
 0x1ea   :  { %455 = shalt.err (!%p452_p5)
}
 0x1eb   :  { %259 = dma.vmem_to_hbm [thread:$0]  %s257_s12, 128, %s565_s5, [#allocation4]  }
 0x1ec   :  { %468 = dma.done.wait [#allocation4], 128  }
 0x1ed   :  { %469 = vsyncadd [#allocation4], 4294967168 }
 0x1ee   :  { %263 = vsyncpa [#allocation3], 1 }
 0x1ef   :  { %264 = vsyncpa [#allocation6], 1 }
 0x1f0   :  { %265 = vsyncpa [#allocation4], 1 }

// kernel: tpu_custom_call.1
= control target key start
LH: loop header
LB: loop body
LE: loop exit
PB: predicated region body
PF: predicated region fallthrough
CT: control target
= control target key end

     0   :  { %10 = vsyncpa [#allocation3], 0  ;;  %s560_s0 = inlined_call_operand.hbm [shape: f32[8,128], index: 0, kind: input, shape index: {}]   ;;  %s561_s1 = inlined_call_operand.hbm [shape: f32[128,128], index: 1, kind: input, shape index: {}]   ;;  %s562_s2 = inlined_call_operand.vmem [shape: f32[1,128], index: 2, kind: input, shape index: {}]   ;;  %s563_s3 = inlined_call_operand.hbm [shape: f32[128,128], index: 3, kind: input, shape index: {}]   ;;  %s564_s4 = inlined_call_operand.vmem [shape: f32[1,128], index: 4, kind: input, shape index: {}]   ;;  %s565_s5 = inlined_call_operand.hbm [shape: f32[8,128], index: 5, kind: output, shape index: {}]  }
   0x1   :  { %11 = vsyncpa [#allocation6], 0 }
   0x2   :  { %12 = vsyncpa [#allocation4], 0  ;;  %s470_s18 = smov [#allocation5]  }
   0x3   :  { %s28_s19 = sshll.u32 %s470_s18, 4  ;;  %s29_s19 = int_to_ptr.vmem [resolvable:$true] %s28_s19 }
   0x4   :  { %s392_s20 = scalar_lea.vmem %s29_s19, 2048  ;;  %p397_p1 = scmp.lt.s32.totalorder %s29_s19, %s29_s19 }
   0x5   :  { %p393_p0 = scmp.ne.s32.totalorder %s29_s19, %s392_s20  ;;  %p398_p2 = scmp.lt.s32.totalorder %s392_s20, %s392_s20 }
   0x7   :  { %p399_p3 = por %p398_p2, %p397_p1 }
   0x9   :  { %p400_p4 = pnand %p399_p3, %p393_p0 }
   0xb   :  { %403 = shalt.err (!%p400_p4)
}
   0xc   :  { %s471_s21 = smov 128   ;;  %s472_s22 = smov 8  }
   0xd   :  { %34 = dma.hbm_to_vmem [thread:$0]  %s561_s1, 2048, %s29_s19, [#allocation6], %s471_s21, %s471_s21, %s472_s22  }
   0xe   :  { %s473_s25 = smov [#allocation2]   ;;  %s474_s27 = smov [#allocation7]  }
   0xf   :  { %s19_s26 = sshll.u32 %s473_s25, 4  ;;  %s42_s28 = sshll.u32 %s474_s27, 4  ;;  %s20_s26 = int_to_ptr.vmem [resolvable:$true] %s19_s26  ;;  %s43_s28 = int_to_ptr.vmem [resolvable:$true] %s42_s28 }
  0x10   :  { %s412_s29 = scalar_lea.vmem %s20_s26, 128  ;;  %p417_p6 = scmp.lt.s32.totalorder %s20_s26, %s20_s26 }
  0x11   :  { %p413_p5 = scmp.ne.s32.totalorder %s20_s26, %s412_s29  ;;  %p418_p7 = scmp.lt.s32.totalorder %s412_s29, %s412_s29 }
  0x13   :  { %p419_p8 = por %p418_p7, %p417_p6 }
  0x15   :  { %p420_p9 = pnand %p419_p8, %p413_p5 }
  0x17   :  { %423 = shalt.err (!%p420_p9)
}
  0x18   :  { %22 = dma.hbm_to_vmem [thread:$0]  %s560_s0, 128, %s20_s26, [#allocation3]  }
  0x19   :  { %s432_s7 = scalar_lea.vmem %s43_s28, 2048  ;;  %p437_p11 = scmp.lt.s32.totalorder %s43_s28, %s43_s28 }
  0x1a   :  { %p433_p10 = scmp.ne.s32.totalorder %s43_s28, %s432_s7  ;;  %p438_p12 = scmp.lt.s32.totalorder %s432_s7, %s432_s7 }
  0x1c   :  { %p439_p13 = por %p438_p12, %p437_p11 }
  0x1e   :  { %p440_p0 = pnand %p439_p13, %p433_p10 }
  0x20   :  { %443 = shalt.err (!%p440_p0)
}
  0x21   :  { %48 = dma.hbm_to_vmem [thread:$0]  %s563_s3, 2048, %s43_s28, [#allocation6], %s471_s21, %s471_s21, %s472_s22  }
  0x22   :  { %464 = dma.done.wait [#allocation3], 128  }
  0x23   :  { %465 = vsyncadd [#allocation3], 4294967168 }
  0x24   :  { %466 = dma.done.wait [#allocation6], 4096  }
  0x25   :  { %467 = vsyncadd [#allocation6], 4294963200  ;;  %v475_v0 = vmov 0.0   ;;  %vm476_vm0 = vmmov 0   ;;  %v76_v1 = vld [vmem:[#allocation5 + $0x78] sm:$0xff]  ;;  %v75_v2 = vld [vmem:[#allocation5 + $0x70] sm:$0xff] }
  0x26   :  { %302 = vmatprep.subr.mxu0 %v475_v0  ;;  %334 = vmatprep.mubr.msk.f32.mxu0 %vm476_vm0, %v475_v0  ;;  %v74_v3 = vld [vmem:[#allocation5 + $0x68] sm:$0xff]  ;;  %v73_v4 = vld [vmem:[#allocation5 + $0x60] sm:$0xff]  ;;  %v170_v5 = vld [vmem:[#allocation7 + $0x78] sm:$0xff]  ;;  %s477_s11 = smov [#allocation8]  }
  0x27   :  { %337 = vmatprep.subr.mxu1 %v475_v0  ;;  %369 = vmatprep.mubr.msk.f32.mxu1 %vm476_vm0, %v475_v0  ;;  %v72_v6 = vld [vmem:[#allocation5 + $0x58] sm:$0xff]  ;;  %v169_v7 = vld [vmem:[#allocation7 + $0x70] sm:$0xff]  ;;  %v168_v8 = vld [vmem:[#allocation7 + $0x68] sm:$0xff]  ;;  %s256_s12 = sshll.u32 %s477_s11, 4  ;;  %s257_s12 = int_to_ptr.vmem [resolvable:$true] %s256_s12 }
  0x28   :  { %303 = vmatpush3.msra.mxu0 %v76_v1  ;;  %338 = vmatpush3.msra.mxu1 %v170_v5  ;;  %v71_v9 = vld [vmem:[#allocation5 + $0x50] sm:$0xff]  ;;  %v167_v10 = vld [vmem:[#allocation7 + $0x60] sm:$0xff]  ;;  %v70_v11 = vld [vmem:[#allocation5 + $0x48] sm:$0xff]  ;;  %p449_p2 = scmp.lt.s32.totalorder %s257_s12, %s257_s12 }
  0x29   :  { %304 = vmatprep.subr.mxu0 %v475_v0  ;;  %339 = vmatprep.subr.mxu1 %v475_v0  ;;  %v166_v12 = vld [vmem:[#allocation7 + $0x58] sm:$0xff]  ;;  %v69_v13 = vld [vmem:[#allocation5 + $0x40] sm:$0xff]  ;;  %v165_v14 = vld [vmem:[#allocation7 + $0x50] sm:$0xff] }
  0x2a   :  { %305 = vmatpush3.msra.mxu0 %v75_v2  ;;  %340 = vmatpush3.msra.mxu1 %v169_v7  ;;  %v68_v15 = vld [vmem:[#allocation5 + $0x38] sm:$0xff]  ;;  %v164_v16 = vld [vmem:[#allocation7 + $0x48] sm:$0xff]  ;;  %v67_v17 = vld [vmem:[#allocation5 + $0x30] sm:$0xff] }
  0x2b   :  { %306 = vmatprep.subr.mxu0 %v475_v0  ;;  %341 = vmatprep.subr.mxu1 %v475_v0  ;;  %v66_v18 = vld [vmem:[#allocation5 + $0x28] sm:$0xff]  ;;  %v65_v19 = vld [vmem:[#allocation5 + $0x20] sm:$0xff]  ;;  %v64_v20 = vld [vmem:[#allocation5 + $0x18] sm:$0xff] }
  0x2c   :  { %307 = vmatpush3.msra.mxu0 %v74_v3  ;;  %342 = vmatpush3.msra.mxu1 %v168_v8  ;;  %v63_v21 = vld [vmem:[#allocation5 + $0x10] sm:$0xff]  ;;  %v62_v22 = vld [vmem:[#allocation5 + $0x8] sm:$0xff]  ;;  %v61_v23 = vld [vmem:[#allocation5] sm:$0xff] }
  0x2d   :  { %308 = vmatprep.subr.mxu0 %v475_v0  ;;  %343 = vmatprep.subr.mxu1 %v475_v0  ;;  %v60_v24 = vld [vmem:[#allocation2] sm:$0xff]  ;;  %v163_v25 = vld [vmem:[#allocation7 + $0x40] sm:$0xff]  ;;  %v161_v27 = vld [vmem:[#allocation7 + $0x30] sm:$0xff] }
  0x2e   :  { %309 = vmatpush3.msra.mxu0 %v73_v4  ;;  %344 = vmatpush3.msra.mxu1 %v167_v10  ;;  %v162_v26 = vld [vmem:[#allocation7 + $0x38] sm:$0xff]  ;;  %v160_v28 = vld [vmem:[#allocation7 + $0x28] sm:$0xff]  ;;  %v159_v29 = vld [vmem:[#allocation7 + $0x20] sm:$0xff] }
  0x2f   :  { %310 = vmatprep.subr.mxu0 %v475_v0  ;;  %345 = vmatprep.subr.mxu1 %v475_v0  ;;  %v158_v30 = vld [vmem:[#allocation7 + $0x18] sm:$0xff]  ;;  %v157_v31 = vld [vmem:[#allocation7 + $0x10] sm:$0xff]  ;;  %v156_v32 = vld [vmem:[#allocation7 + $0x8] sm:$0xff] }
  0x30   :  { %311 = vmatpush3.msra.mxu0 %v72_v6  ;;  %346 = vmatpush3.msra.mxu1 %v166_v12  ;;  %v155_v33 = vld [vmem:[#allocation7] sm:$0xff]  ;;  %v266_v34 = vld [vmem:[%s562_s2] ss:$0 sm:$0xff]  ;;  %s444_s2 = scalar_lea.vmem %s257_s12, 128 }
  0x31   :  { %312 = vmatprep.subr.mxu0 %v475_v0  ;;  %347 = vmatprep.subr.mxu1 %v475_v0  ;;  %v267_v39 = vld [vmem:[%s564_s4] ss:$0 sm:$0xff]  ;;  %p445_p1 = scmp.ne.s32.totalorder %s257_s12, %s444_s2  ;;  %p450_p3 = scmp.lt.s32.totalorder %s444_s2, %s444_s2 }
  0x32   :  { %313 = vmatpush3.msra.mxu0 %v71_v9  ;;  %348 = vmatpush3.msra.mxu1 %v165_v14 }
  0x33   :  { %314 = vmatprep.subr.mxu0 %v475_v0  ;;  %349 = vmatprep.subr.mxu1 %v475_v0  ;;  %p451_p4 = por %p450_p3, %p449_p2 }
  0x34   :  { %315 = vmatpush3.msra.mxu0 %v70_v11  ;;  %350 = vmatpush3.msra.mxu1 %v164_v16 }
  0x35   :  { %316 = vmatprep.subr.mxu0 %v475_v0  ;;  %351 = vmatprep.subr.mxu1 %v475_v0  ;;  %p452_p5 = pnand %p451_p4, %p445_p1 }
  0x36   :  { %317 = vmatpush3.msra.mxu0 %v69_v13  ;;  %352 = vmatpush3.msra.mxu1 %v163_v25 }
  0x37   :  { %318 = vmatprep.subr.mxu0 %v475_v0  ;;  %353 = vmatprep.subr.mxu1 %v475_v0 }
  0x38   :  { %319 = vmatpush3.msra.mxu0 %v68_v15  ;;  %354 = vmatpush3.msra.mxu1 %v162_v26 }
  0x39   :  { %320 = vmatprep.subr.mxu0 %v475_v0  ;;  %355 = vmatprep.subr.mxu1 %v475_v0 }
  0x3a   :  { %321 = vmatpush3.msra.mxu0 %v67_v17  ;;  %356 = vmatpush3.msra.mxu1 %v161_v27 }
  0x3b   :  { %322 = vmatprep.subr.mxu0 %v475_v0  ;;  %357 = vmatprep.subr.mxu1 %v475_v0 }
  0x3c   :  { %323 = vmatpush3.msra.mxu0 %v66_v18  ;;  %358 = vmatpush3.msra.mxu1 %v160_v28 }
  0x3d   :  { %324 = vmatprep.subr.mxu0 %v475_v0  ;;  %359 = vmatprep.subr.mxu1 %v475_v0 }
  0x3e   :  { %325 = vmatpush3.msra.mxu0 %v65_v19  ;;  %360 = vmatpush3.msra.mxu1 %v159_v29 }
  0x3f   :  { %326 = vmatprep.subr.mxu0 %v475_v0  ;;  %361 = vmatprep.subr.mxu1 %v475_v0 }
  0x40   :  { %327 = vmatpush3.msra.mxu0 %v64_v20  ;;  %362 = vmatpush3.msra.mxu1 %v158_v30 }
  0x41   :  { %328 = vmatprep.subr.mxu0 %v475_v0  ;;  %363 = vmatprep.subr.mxu1 %v475_v0 }
  0x42   :  { %329 = vmatpush3.msra.mxu0 %v63_v21  ;;  %364 = vmatpush3.msra.mxu1 %v157_v31 }
  0x43   :  { %330 = vmatprep.subr.mxu0 %v475_v0  ;;  %365 = vmatprep.subr.mxu1 %v475_v0 }
  0x44   :  { %331 = vmatpush3.msra.mxu0 %v62_v22  ;;  %366 = vmatpush3.msra.mxu1 %v156_v32 }
  0x45   :  { %332 = vmatprep.subr.mxu0 %v475_v0  ;;  %367 = vmatprep.subr.mxu1 %v475_v0 }
  0x46   :  { %333 = vmatpush3.msra.mxu0 %v61_v23  ;;  %368 = vmatpush3.msra.mxu1 %v155_v33 }
  0x47   :  { %335 = vmatmul.mubr.f32.vlgmr.msra.gmra.mxu0 %v60_v24 }
 0x107   :  { %v150_v35 = vpop.f32.mrf.mxu0 }
 0x108   :  { %v151_v36 = vadd.f32 %v266_v34, %v150_v35 }
 0x109   :  { %v336_v37 = vpop.f32.mrf.mxu0 }
 0x10a   :  { %380 = vtanh.f32 %v151_v36 }
 0x117   :  { %v381_v38 = vpop.eup %380 }
 0x118   :  { %370 = vmatmul.mubr.f32.vlgmr.msra.gmra.mxu1 %v381_v38 }
 0x1d8   :  { %v244_v40 = vpop.f32.mrf.mxu1 }
 0x1d9   :  { %v245_v41 = vadd.f32 %v267_v39, %v244_v40 }
 0x1da   :  { %v371_v42 = vpop.f32.mrf.mxu1 }
 0x1db   :  { %382 = vtanh.f32 %v245_v41 }
 0x1e8   :  { %v383_v43 = vpop.eup %382 }
 0x1e9   :  { %249 = vst [vmem:[#allocation8] sm:$0xff] %v383_v43 }
 0x1ea   :  { %455 = shalt.err (!%p452_p5)
}
 0x1eb   :  { %259 = dma.vmem_to_hbm [thread:$0]  %s257_s12, 128, %s565_s5, [#allocation4]  }
 0x1ec   :  { %468 = dma.done.wait [#allocation4], 128  }
 0x1ed   :  { %469 = vsyncadd [#allocation4], 4294967168 }
 0x1ee   :  { %263 = vsyncpa [#allocation3], 1 }
 0x1ef   :  { %264 = vsyncpa [#allocation6], 1 }
 0x1f0   :  { %265 = vsyncpa [#allocation4], 1 }

</bundles_post_ra>
